<compile_context>
chip_gen: v6e
topology: v6e:2x2x1
jax: 0.10.0
libtpu: 0.0.40
codegen_flags: <defaults>
</compile_context>

<pallas_src>
import math

import jax
import jax.numpy as jnp
from jax.experimental import pallas as pl
from jax.experimental.pallas import tpu as pltpu


# ----------------------------------------------------------------------------
# Parameter packing: fuse input_sigma + mu head, pack W^T|b blocks into one
# tile-aligned slab (each layer at a 128-lane column offset, bias as last col).
# ----------------------------------------------------------------------------
def _fuse_and_pack(params, n_hidden, n_output):
    """Returns (slab [R, C] f32, metas: list of (col_offset, k_in, d_out))."""
    L = len(n_hidden)
    n_lin = L + 1                      # linears per path (input + hiddens + head)
    mu_path = params[:n_lin]
    sg_path = params[n_lin:]

    fused = list(mu_path[:-1])         # trunk: input + hidden_i (tanh'd)

    # input_sigma and the mu head consume the same hidden h -> one fused matmul.
    # Order [input_sigma ; mu] so the tanh'd part starts at sublane 0.
    w_mu, b_mu = mu_path[-1]
    w_is, b_is = sg_path[0]
    fused.append((jnp.concatenate([w_is, w_mu], axis=1),
                  jnp.concatenate([b_is, b_mu], axis=0)))

    fused.extend(sg_path[1:])          # hidden_sigma_i ... + sigma head

    COL = 128                          # lane-aligned column stride per layer
    max_out = max(w.shape[1] for w, _ in fused)
    R = ((max_out + 7) // 8) * 8       # sublane-aligned row extent
    C = COL * len(fused)

    slab = jnp.zeros((R, C), jnp.float32)
    metas = []
    for k, (w, b) in enumerate(fused):
        d_in, d_out = w.shape
        # [d_out, d_in + 1]: transposed weight with the bias folded as last col
        wt_aug = jnp.concatenate(
            [w.T.astype(jnp.float32), b.astype(jnp.float32)[:, None]], axis=1)
        slab = slab.at[:d_out, k * COL:k * COL + d_in + 1].set(wt_aug)
        metas.append((k * COL, d_in + 1, d_out))
    return slab, metas


# ----------------------------------------------------------------------------
# Kernel: activations [features, bm] (batch on lanes), bias folded into dots.
# ----------------------------------------------------------------------------
def _make_kernel(metas, n_hidden0, n_hidden_len, n_output):
    n_trunk = n_hidden_len             # input + (L-1) hidden linears (all tanh'd)

    def kernel(x_ref, p_ref, o_ref):
        bm = x_ref.shape[1]
        ones = jnp.ones((1, bm), jnp.float32)   # hoisted; reused every layer

        def lin(h_aug, meta):
            c, k_in, d_out = meta      # static ints -> tile-aligned static slices
            wt = p_ref[0:d_out, c:c + k_in]
            # bias is wt's last column, h_aug's last row is the constant 1
            return jnp.dot(wt, h_aug, preferred_element_type=jnp.float32)

        h = x_ref[...]                 # [n_feature + 1, bm] (ones row appended)

        # trunk: tanh(input(x)), tanh(hidden_i(...))
        for k in range(n_trunk):
            h = jnp.concatenate([jnp.tanh(lin(h, metas[k])), ones], axis=0)

        # fused input_sigma + mu head (single MXU dot, then aligned splits)
        f = lin(h, metas[n_trunk])
        mu = f[n_hidden0:n_hidden0 + n_output, :]
        h = jnp.concatenate([jnp.tanh(f[0:n_hidden0, :]), ones], axis=0)

        # sigma hiddens
        for k in range(n_trunk + 1, len(metas) - 1):
            h = jnp.concatenate([jnp.tanh(lin(h, metas[k])), ones], axis=0)

        # sigma head
        sigma = lin(h, metas[-1])

        # torch.cat((mu, sigma), dim=1) in transposed layout: two lane-dense
        # sub-stores (no concat temp).
        o_ref[0:n_output, :] = mu
        o_ref[n_output:2 * n_output, :] = sigma

    return kernel


# ----------------------------------------------------------------------------
# Wrapper
# ----------------------------------------------------------------------------
def _num_tensorcores():
    # v5e/v6e: 1 TC per chip; v7x: 2.  Heuristic query, defaults to 1.
    try:
        return max(1, int(getattr(jax.devices()[0], "num_cores", 1)))
    except Exception:
        return 1


def bnn_forward(x, params, n_hidden, n_output, *, block_batch=None):
    batch, n_feature = x.shape
    slab, metas = _fuse_and_pack(params, n_hidden, n_output)
    R, C = slab.shape

    # One batch block per TensorCore; lane-dense blocks (multiple of 128).
    if block_batch is None:
        bm = ((pl.cdiv(batch, _num_tensorcores()) + 127) // 128) * 128
    else:
        bm = ((block_batch + 127) // 128) * 128
    bm = max(bm, 128)
    padded = ((batch + bm - 1) // bm) * bm
    grid = padded // bm

    # Feed x lane-dense: [n_feature, padded_batch] + constant-1 row (bias fold).
    xt = x.astype(jnp.float32).T
    if padded != batch:
        xt = jnp.pad(xt, ((0, 0), (0, padded - batch)))
    x_aug = jnp.concatenate([xt, jnp.ones((1, padded), jnp.float32)], axis=0)

    kernel = _make_kernel(metas, n_hidden[0], len(n_hidden), n_output)
    out = pl.pallas_call(
        kernel,
        out_shape=jax.ShapeDtypeStruct((2 * n_output, padded), jnp.float32),
        grid_spec=pl.GridSpec(
            grid=(grid,),
            in_specs=[
                pl.BlockSpec((n_feature + 1, bm), lambda i: (0, i)),
                # weight slab: same block every step -> DMA'd once, VMEM-resident
                pl.BlockSpec((R, C), lambda i: (0, 0)),
            ],
            out_specs=pl.BlockSpec((2 * n_output, bm), lambda i: (0, i)),
        ),
        compiler_params=pltpu.CompilerParams(
            dimension_semantics=("parallel",)),   # v7x: shard batch over 2 TCs
    )(x_aug, slab)

    return out[:, :batch].T                       # [batch, 2*n_output]


# ----------------------------------------------------------------------------
# Init + plain-JAX reference (unfused params, mirrors the PyTorch forward)
# ----------------------------------------------------------------------------
def init_params(key, n_feature, n_hidden, n_output):
    """PyTorch-style Linear init: U(-1/sqrt(fan_in), 1/sqrt(fan_in))."""
    sizes = []
    # mu path: input, hidden_i..., mu
    sizes.append((n_feature, n_hidden[0]))
    for i in range(len(n_hidden) - 1):
        sizes.append((n_hidden[i], n_hidden[i + 1]))
    sizes.append((n_hidden[-1], n_output))
    # sigma path: input_sigma, hidden_sigma_i..., sigma
    sizes.append((n_feature, n_hidden[0]))
    for i in range(len(n_hidden) - 1):
        sizes.append((n_hidden[i], n_hidden[i + 1]))
    sizes.append((n_hidden[-1], n_output))

    params = []
    for fan_in, fan_out in sizes:
        key, kw, kb = jax.random.split(key, 3)
        bound = 1.0 / math.sqrt(fan_in)
        w = jax.random.uniform(kw, (fan_in, fan_out), jnp.float32, -bound, bound)
        b = jax.random.uniform(kb, (fan_out,), jnp.float32, -bound, bound)
        params.append((w, b))
    return params


def bnn_reference(x, params, n_hidden, n_output):
    n_lin = len(n_hidden) + 1
    h = x
    for k in range(n_lin - 1):
        w, b = params[k]
        h = jnp.tanh(h @ w + b)
    w, b = params[n_lin - 1]
    mu = h @ w + b
    for k in range(n_lin - 1):
        w, b = params[n_lin + k]
        h = jnp.tanh(h @ w + b)
    w, b = params[2 * n_lin - 1]
    sigma = h @ w + b
    return jnp.concatenate([mu, sigma], axis=1)


if __name__ == "__main__":
    # n_hidden[-1] == n_feature is required by the PyTorch forward
    # (input_sigma is applied to the trunk's hidden activation).
    n_feature = 4
    n_hidden = [16, 4]
    n_output = 2
    batch = 64

    key = jax.random.PRNGKey(0)
    key, kx = jax.random.split(key)
    x = jax.random.normal(kx, (batch, n_feature), jnp.float32)
    params = init_params(key, n_feature, n_hidden, n_output)

    out = bnn_forward(x, params, n_hidden, n_output)
    out = jax.block_until_ready(out)

    ref = bnn_reference(x, params, n_hidden, n_output)
    assert out.shape == (batch, 2 * n_output), out.shape
    assert jnp.allclose(out, ref, rtol=1e-4, atol=1e-4), "mismatch vs reference"

    print("KERNEL_OK")
</pallas_src>

<mosaic_0001>
module attributes {stable_mosaic.version = 11 : i64} {
  func.func @kernel(%arg0: i32, %arg1: memref<5x128xf32, #tpu.memory_space<vmem>>, %arg2: memref<24x640xf32, #tpu.memory_space<vmem>>, %arg3: memref<4x128xf32, #tpu.memory_space<vmem>>) attributes {dimension_semantics = [#tpu.dimension_semantics<parallel>], iteration_bounds = array<i64: 1>, scalar_prefetch = 0 : i64, scratch_operands = 0 : i64, tpu.core_type = #tpu.core_type<tc>, window_params = [{transform_indices = @transform_0, window_bounds = array<i64: 5, 128>}, {pipeline_mode = #tpu.pipeline_mode<synchronous>, transform_indices = @transform_1, window_bounds = array<i64: 24, 640>}, {transform_indices = @transform_2, window_bounds = array<i64: 4, 128>}]} {
    %cst = arith.constant 1.000000e+00 : f32
    %0 = vector.broadcast %cst : f32 to vector<1x128xf32>
    %c0 = arith.constant 0 : index
    %c0_0 = arith.constant 0 : index
    %1 = vector.load %arg1[%c0, %c0_0] : memref<5x128xf32, #tpu.memory_space<vmem>>, vector<5x128xf32>
    %c0_1 = arith.constant 0 : index
    %c0_2 = arith.constant 0 : index
    %2 = vector.load %arg2[%c0_1, %c0_2] : memref<24x640xf32, #tpu.memory_space<vmem>>, vector<16x5xf32>
    %cst_3 = arith.constant dense<0.000000e+00> : vector<16x128xf32>
    %3 = tpu.matmul %2, %1, %cst_3 {dimension_numbers = #tpu.dot_dimension_numbers<[1], [0], [0], [1], [0, 0, 1, 1], [], []>} : vector<16x5xf32>, vector<5x128xf32>, vector<16x128xf32> -> vector<16x128xf32>
    %4 = math.tanh %3 : vector<16x128xf32>
    %5 = tpu.concatenate %4, %0 in 0 : vector<16x128xf32>, vector<1x128xf32> -> vector<17x128xf32>
    %c0_4 = arith.constant 0 : index
    %c128 = arith.constant 128 : index
    %6 = vector.load %arg2[%c0_4, %c128] : memref<24x640xf32, #tpu.memory_space<vmem>>, vector<4x17xf32>
    %cst_5 = arith.constant dense<0.000000e+00> : vector<4x128xf32>
    %7 = tpu.matmul %6, %5, %cst_5 {dimension_numbers = #tpu.dot_dimension_numbers<[1], [0], [0], [1], [0, 0, 1, 1], [], []>} : vector<4x17xf32>, vector<17x128xf32>, vector<4x128xf32> -> vector<4x128xf32>
    %8 = math.tanh %7 : vector<4x128xf32>
    %9 = tpu.concatenate %8, %0 in 0 : vector<4x128xf32>, vector<1x128xf32> -> vector<5x128xf32>
    %c0_6 = arith.constant 0 : index
    %c256 = arith.constant 256 : index
    %10 = vector.load %arg2[%c0_6, %c256] : memref<24x640xf32, #tpu.memory_space<vmem>>, vector<18x5xf32>
    %cst_7 = arith.constant dense<0.000000e+00> : vector<18x128xf32>
    %11 = tpu.matmul %10, %9, %cst_7 {dimension_numbers = #tpu.dot_dimension_numbers<[1], [0], [0], [1], [0, 0, 1, 1], [], []>} : vector<18x5xf32>, vector<5x128xf32>, vector<18x128xf32> -> vector<18x128xf32>
    %12 = vector.extract_strided_slice %11 {offsets = [16, 0], sizes = [2, 128], strides = [1, 1]} : vector<18x128xf32> to vector<2x128xf32>
    %13 = vector.extract_strided_slice %11 {offsets = [0, 0], sizes = [16, 128], strides = [1, 1]} : vector<18x128xf32> to vector<16x128xf32>
    %14 = math.tanh %13 : vector<16x128xf32>
    %15 = tpu.concatenate %14, %0 in 0 : vector<16x128xf32>, vector<1x128xf32> -> vector<17x128xf32>
    %c0_8 = arith.constant 0 : index
    %c384 = arith.constant 384 : index
    %16 = vector.load %arg2[%c0_8, %c384] : memref<24x640xf32, #tpu.memory_space<vmem>>, vector<4x17xf32>
    %cst_9 = arith.constant dense<0.000000e+00> : vector<4x128xf32>
    %17 = tpu.matmul %16, %15, %cst_9 {dimension_numbers = #tpu.dot_dimension_numbers<[1], [0], [0], [1], [0, 0, 1, 1], [], []>} : vector<4x17xf32>, vector<17x128xf32>, vector<4x128xf32> -> vector<4x128xf32>
    %18 = math.tanh %17 : vector<4x128xf32>
    %19 = tpu.concatenate %18, %0 in 0 : vector<4x128xf32>, vector<1x128xf32> -> vector<5x128xf32>
    %c0_10 = arith.constant 0 : index
    %c512 = arith.constant 512 : index
    %20 = vector.load %arg2[%c0_10, %c512] : memref<24x640xf32, #tpu.memory_space<vmem>>, vector<2x5xf32>
    %cst_11 = arith.constant dense<0.000000e+00> : vector<2x128xf32>
    %21 = tpu.matmul %20, %19, %cst_11 {dimension_numbers = #tpu.dot_dimension_numbers<[1], [0], [0], [1], [0, 0, 1, 1], [], []>} : vector<2x5xf32>, vector<5x128xf32>, vector<2x128xf32> -> vector<2x128xf32>
    %c0_12 = arith.constant 0 : index
    %c0_13 = arith.constant 0 : index
    %22 = vector.load %arg3[%c0_12, %c0_13] : memref<4x128xf32, #tpu.memory_space<vmem>>, vector<2x128xf32>
    tpu.vector_store %arg3[%c0_12, %c0_13], %12 {strides = array<i32>} : memref<4x128xf32, #tpu.memory_space<vmem>>, vector<2x128xf32>,
    %c2 = arith.constant 2 : index
    %c0_14 = arith.constant 0 : index
    %23 = vector.load %arg3[%c2, %c0_14] : memref<4x128xf32, #tpu.memory_space<vmem>>, vector<2x128xf32>
    tpu.vector_store %arg3[%c2, %c0_14], %21 {strides = array<i32>} : memref<4x128xf32, #tpu.memory_space<vmem>>, vector<2x128xf32>,
    return
  }
  func.func @transform_0(%arg0: i32) -> (i32, i32) {
    %c0_i32 = arith.constant 0 : i32
    %c0_i32_0 = arith.constant 0 : i32
    return %c0_i32, %arg0 : i32, i32
  }
  func.func @transform_1(%arg0: i32) -> (i32, i32) {
    %c0_i32 = arith.constant 0 : i32
    %c0_i32_0 = arith.constant 0 : i32
    %c0_i32_1 = arith.constant 0 : i32
    return %c0_i32, %c0_i32_0 : i32, i32
  }
  func.func @transform_2(%arg0: i32) -> (i32, i32) {
    %c0_i32 = arith.constant 0 : i32
    %c0_i32_0 = arith.constant 0 : i32
    return %c0_i32, %arg0 : i32, i32
  }
}

</mosaic_0001>

<bundles_post_ra>
// kernel: tpu_custom_call.1
= control target key start
LH: loop header
LB: loop body
LE: loop exit
PB: predicated region body
PF: predicated region fallthrough
CT: control target
= control target key end

     0   :  { %7 = vsyncpa [#allocation3], 0  ;;  %s688_s0 = inlined_call_operand.hbm [shape: f32[5,128], index: 0, kind: input, shape index: {}]   ;;  %s689_s1 = inlined_call_operand.hbm [shape: f32[24,640], index: 1, kind: input, shape index: {}]   ;;  %s690_s2 = inlined_call_operand.hbm [shape: f32[4,128], index: 2, kind: output, shape index: {}]  }
   0x1   :  { %8 = vsyncpa [#allocation6], 0 }
   0x2   :  { %9 = vsyncpa [#allocation4], 0  ;;  %s634_s9 = smov [#allocation2]   ;;  %s635_s11 = smov [#allocation5]  }
   0x3   :  { %s16_s10 = sshll.u32 %s634_s9, 4  ;;  %s25_s12 = sshll.u32 %s635_s11, 4  ;;  %s17_s10 = int_to_ptr.vmem [resolvable:$true] %s16_s10  ;;  %s26_s12 = int_to_ptr.vmem [resolvable:$true] %s25_s12 }
   0x4   :  { %s576_s13 = scalar_lea.vmem %s17_s10, 128  ;;  %p581_p1 = scmp.lt.s32.totalorder %s17_s10, %s17_s10 }
   0x5   :  { %p577_p0 = scmp.ne.s32.totalorder %s17_s10, %s576_s13  ;;  %p582_p2 = scmp.lt.s32.totalorder %s576_s13, %s576_s13 }
   0x7   :  { %p583_p3 = por %p582_p2, %p581_p1 }
   0x9   :  { %p584_p4 = pnand %p583_p3, %p577_p0 }
   0xb   :  { %587 = shalt.err (!%p584_p4)
}
   0xc   :  { %19 = dma.hbm_to_vmem [thread:$0]  %s688_s0, 128, %s17_s10, [#allocation3]  }
   0xd   :  { %s596_s16 = scalar_lea.vmem %s26_s12, 1920  ;;  %p601_p6 = scmp.lt.s32.totalorder %s26_s12, %s26_s12 }
   0xe   :  { %p597_p5 = scmp.ne.s32.totalorder %s26_s12, %s596_s16  ;;  %p602_p7 = scmp.lt.s32.totalorder %s596_s16, %s596_s16 }
  0x10   :  { %p603_p8 = por %p602_p7, %p601_p6 }
  0x12   :  { %p604_p9 = pnand %p603_p8, %p597_p5 }
  0x14   :  { %607 = shalt.err (!%p604_p9)
}
  0x15   :  { %s636_s17 = smov 640   ;;  %s637_s18 = smov 40  }
  0x16   :  { %31 = dma.hbm_to_vmem [thread:$0]  %s689_s1, 1920, %s26_s12, [#allocation6], %s636_s17, %s636_s17, %s637_s18  }
  0x17   :  { %628 = dma.done.wait [#allocation3], 128  }
  0x18   :  { %629 = vsyncadd [#allocation3], 4294967168 }
  0x19   :  { %630 = dma.done.wait [#allocation6], 1920  }
  0x1a   :  { %631 = vsyncadd [#allocation6], 4294965376  ;;  %vm48_vm0 = vcmask 1044480   ;;  %vm41_vm1 = vcmask 39936   ;;  %v38_v0 = vld [vmem:[#allocation2] sm:$0x1f] }
  0x1b   :  { %v39_v1 = vld [vmem:[#allocation5] sm:$0xff]  ;;  %v40_v2 = vld [vmem:[#allocation5 + $0x28] sm:$0xff]  ;;  %509 = vmatprep.subr.msk.mxu0 %vm48_vm0, %v38_v0  ;;  %vm134_vm2 = vcmask 1040384   ;;  %v638_v3 = vmov 0.0   ;;  %v639_v4 = vmov 1.0   ;;  %vm640_vm3 = vmmov 0  }
  0x1c   :  { %511 = vmatprep.mubr.msk.f32.mxu0 %vm41_vm1, %v39_v1  ;;  %510 = vmatpush3.msk.msra.mxu0 %vm48_vm0, %v38_v0  ;;  %v129_v8 = vld [vmem:[#allocation5 + $0x8] sm:$0xf]  ;;  %vm130_vm4 = vcmask 138240   ;;  %vm209_vm5 = vcmask 1043456   ;;  %v211_v13 = vld [vmem:[#allocation5 + $0x10] sm:$0xff]  ;;  %v212_v15 = vld [vmem:[#allocation5 + $0x38] sm:$0xff] }
  0x1d   :  { %512 = vmatmul.mubr.msk.f32.vlgmr.msra.gmra.mxu0 %vm41_vm1, %v40_v2  ;;  %514 = vmatprep.subr.mxu1 %v638_v3  ;;  %v308_v21 = vld [vmem:[#allocation5 + $0x18] sm:$0xf]  ;;  %v213_v23 = vld [vmem:[#allocation5 + $0x60] sm:$0x3]  ;;  %s641_s0 = smov [#allocation7]  }
  0x1e   :  { %523 = vmatprep.subr.mxu0 %v638_v3  ;;  %515 = vmatpush3.msk.msra.mxu1 %vm134_vm2, %v639_v4  ;;  %v384_v27 = vld [vmem:[#allocation5 + $0x20] sm:$0x3]  ;;  %s469_s1 = sshll.u32 %s641_s0, 4  ;;  %s470_s1 = int_to_ptr.vmem [resolvable:$true] %s469_s1 }
  0x1f   :  { %516 = vmatprep.subr.mxu1 %v638_v3  ;;  %520 = vmatprep.mubr.msk.f32.mxu1 %vm640_vm3, %v638_v3  ;;  %s608_s21 = scalar_lea.vmem %s470_s1, 64  ;;  %p613_p11 = scmp.lt.s32.totalorder %s470_s1, %s470_s1 }
  0x20   :  { %525 = vmatprep.mubr.msk.f32.mxu0 %vm640_vm3, %v638_v3  ;;  %p609_p10 = scmp.ne.s32.totalorder %s470_s1, %s608_s21  ;;  %p614_p12 = scmp.lt.s32.totalorder %s608_s21, %s608_s21 }
  0x22   :  { %p615_p13 = por %p614_p12, %p613_p11 }
  0x24   :  { %p616_p0 = pnand %p615_p13, %p609_p10 }
  0xdd   :  { %v513_v5 = vpop.f32.mrf.mxu0 }
  0xde   :  { %556 = vtanh.f32 %v513_v5 }
  0xdf   :  { %v118_v6 = vpop.f32.mrf.mxu0 }
  0xe0   :  { %558 = vtanh.f32 %v118_v6 }
  0xeb   :  { %v557_v7 = vpop.eup %556 }
  0xec   :  { %517 = vmatpush3.msra.mxu1 %v557_v7 }
  0xed   :  { %v559_v9 = vpop.eup %558  ;;  %518 = vmatprep.subr.mxu1 %v638_v3 }
  0xee   :  { %519 = vmatpush3.msra.mxu1 %v559_v9 }
  0xef   :  { %521 = vmatmul.mubr.msk.f32.vlgmr.msra.gmra.mxu1 %vm130_vm4, %v129_v8  ;;  %534 = vmatprep.subr.mxu1 %v638_v3 }
  0xf0   :  { %535 = vmatpush3.msk.msra.mxu1 %vm134_vm2, %v639_v4  ;;  %540 = vmatprep.mubr.msk.f32.mxu1 %vm640_vm3, %v638_v3 }
  0xf1   :  { %536 = vmatprep.subr.mxu1 %v638_v3 }
 0x1af   :  { %v204_v10 = vpop.f32.mrf.mxu1 }
 0x1b0   :  { %560 = vtanh.f32 %v204_v10 }
 0x1b1   :  { %v522_v11 = vpop.f32.mrf.mxu1 }
 0x1bd   :  { %v561_v12 = vpop.eup %560 }
 0x1be   :  { %v210_v14 = vsel %vm209_vm5, %v561_v12, 1.0 }
 0x1bf   :  { %524 = vmatpush3.msk.msra.mxu0 %vm48_vm0, %v210_v14 }
 0x1c0   :  { %526 = vmatmul.mubr.msk.f32.vlgmr.msra.gmra.mxu0 %vm41_vm1, %v211_v13 }
 0x1c1   :  { %528 = vmatprep.mubr.msk.f32.mxu0 %vm640_vm3, %v638_v3 }
 0x1c4   :  { %529 = vmatmul.mubr.msk.f32.gmra.mxu0 %vm41_vm1, %v212_v15 }
 0x1c5   :  { %531 = vmatprep.mubr.msk.f32.mxu0 %vm640_vm3, %v638_v3 }
 0x1c8   :  { %532 = vmatmul.mubr.msk.f32.gmra.mxu0 %vm41_vm1, %v213_v23 }
 0x280   :  { %v292_v16 = vpop.f32.mrf.mxu0 }
 0x282   :  { %v527_v17 = vpop.f32.mrf.mxu0 }
 0x284   :  { %v297_v18 = vpop.f32.mrf.mxu0 }
 0x285   :  { %562 = vtanh.f32 %v297_v18 }
 0x286   :  { %v530_v19 = vpop.f32.mrf.mxu0  ;;  %564 = vtanh.f32 %v292_v16 }
 0x288   :  { %v302_v29 = vpop.f32.mrf.mxu0 }
 0x289   :  { %461 = vst [vmem:[#allocation7] sm:$0x3] %v302_v29 }
 0x28a   :  { %v533_v30 = vpop.f32.mrf.mxu0 }
 0x292   :  { %v563_v20 = vpop.eup %562 }
 0x293   :  { %537 = vmatpush3.msra.mxu1 %v563_v20  ;;  %v565_v22 = vpop.eup %564 }
 0x294   :  { %538 = vmatprep.subr.mxu1 %v638_v3 }
 0x295   :  { %539 = vmatpush3.msra.mxu1 %v565_v22 }
 0x296   :  { %541 = vmatmul.mubr.msk.f32.vlgmr.msra.gmra.mxu1 %vm130_vm4, %v308_v21  ;;  %543 = vmatprep.subr.mxu1 %v638_v3 }
 0x297   :  { %545 = vmatprep.mubr.msk.f32.mxu1 %vm640_vm3, %v638_v3 }
 0x356   :  { %v378_v24 = vpop.f32.mrf.mxu1 }
 0x357   :  { %566 = vtanh.f32 %v378_v24 }
 0x358   :  { %v542_v25 = vpop.f32.mrf.mxu1 }
 0x364   :  { %v567_v26 = vpop.eup %566 }
 0x365   :  { %v383_v28 = vsel %vm209_vm5, %v567_v26, 1.0 }
 0x366   :  { %544 = vmatpush3.msk.msra.mxu1 %vm48_vm0, %v383_v28 }
 0x367   :  { %546 = vmatmul.mubr.msk.f32.vlgmr.msra.gmra.mxu1 %vm41_vm1, %v384_v27 }
 0x427   :  { %v457_v31 = vpop.f32.mrf.mxu1 }
 0x428   :  { %462 = vst [vmem:[#allocation7 + $0x2] sm:$0x3] %v457_v31 }
 0x429   :  { %v547_v32 = vpop.f32.mrf.mxu1 }
 0x42a   :  { %619 = shalt.err (!%p616_p0)
}
 0x42b   :  { %472 = dma.vmem_to_hbm [thread:$0]  %s470_s1, 64, %s690_s2, [#allocation4]  }
 0x42c   :  { %632 = dma.done.wait [#allocation4], 64  }
 0x42d   :  { %633 = vsyncadd [#allocation4], 4294967232 }
 0x42e   :  { %476 = vsyncpa [#allocation3], 1 }
 0x42f   :  { %477 = vsyncpa [#allocation6], 1 }
 0x430   :  { %478 = vsyncpa [#allocation4], 1 }

</bundles_post_ra>
